<compile_context>
chip_gen: v5e
topology: v5e:2x2
jax: 0.10.0
libtpu: 0.0.40
codegen_flags: <defaults>
</compile_context>

<pallas_src>
import math

import jax
import jax.numpy as jnp
from jax.experimental import pallas as pl
from jax.experimental.pallas import tpu as pltpu


def _additive_attention_kernel(
    xq_ref, xkv_ref, expand_ref,
    wq_ref, bq_ref,
    wvk_ref, bvk_ref,
    wWq_ref, bWq_ref,
    wWk_ref, bWk_ref,
    wo_ref, bo_ref,
    out_ref, alphas_ref, betas_ref,
):
    Bt, S, D = xq_ref.shape
    H = wWq_ref.shape[-1]
    hd = D // H
    scale = 1.0 / math.sqrt(hd)
    cdt = xq_ref.dtype            # MXU compute dtype (bf16 by default)
    M = Bt * S

    # --- input projections: flatten (Bt, S) -> M so the MXU M-dim is full ---
    xq2 = xq_ref[...].reshape(M, D)
    xkv2 = xkv_ref[...].reshape(M, D)
    expand = expand_ref[...]      # (H, D) f32, one-hot rows (hoisted constant)

    q2 = jnp.dot(xq2, wq_ref[...], preferred_element_type=jnp.float32) + bq_ref[...]
    # fused v/k projection: single matmul with N = 2*D
    vk2 = jnp.dot(xkv2, wvk_ref[...], preferred_element_type=jnp.float32) + bvk_ref[...]
    v2 = vk2[:, :D]
    k2 = vk2[:, D:]

    # --- alphas: softmax over the token axis (per batch element) ---
    a_logits = (jnp.dot(q2.astype(cdt), wWq_ref[...],
                        preferred_element_type=jnp.float32) + bWq_ref[...]) * scale
    a_logits = a_logits.reshape(Bt, S, H)
    a_max = jnp.max(a_logits, axis=1, keepdims=True)
    a_exp = jnp.exp(a_logits - a_max)
    a_inv = pl.reciprocal(jnp.sum(a_exp, axis=1, keepdims=True), approx=True)
    alphas = a_exp * a_inv                                              # (Bt,S,H) f32
    alphas_ref[...] = alphas

    # --- global query: expand per-head weights to per-lane weights with a
    #     one-hot matmul (exact selection, f32), then multiply + reduce over
    #     the token (sublane) axis. Avoids tiny per-batch batched matmuls. ---
    a_full = jnp.dot(alphas.reshape(M, H), expand,
                     preferred_element_type=jnp.float32).reshape(Bt, S, D)
    q3 = q2.reshape(Bt, S, D)
    gq = jnp.sum(a_full * q3, axis=1, keepdims=True)                    # (Bt,1,D)

    # --- betas over p = k * global_query ---
    p3 = k2.reshape(Bt, S, D) * gq                                      # (Bt,S,D) f32
    b_logits = (jnp.dot(p3.reshape(M, D).astype(cdt), wWk_ref[...],
                        preferred_element_type=jnp.float32) + bWk_ref[...]) * scale
    b_logits = b_logits.reshape(Bt, S, H)
    b_max = jnp.max(b_logits, axis=1, keepdims=True)
    b_exp = jnp.exp(b_logits - b_max)
    b_inv = pl.reciprocal(jnp.sum(b_exp, axis=1, keepdims=True), approx=True)
    betas = b_exp * b_inv                                               # (Bt,S,H) f32
    betas_ref[...] = betas

    b_full = jnp.dot(betas.reshape(M, H), expand,
                     preferred_element_type=jnp.float32).reshape(Bt, S, D)
    gk = jnp.sum(b_full * p3, axis=1, keepdims=True)                    # (Bt,1,D)

    # --- output ---
    u2 = (v2.reshape(Bt, S, D) * gk).reshape(M, D)
    # TODO(synk): dropout on r_out(u) is identity here (eval mode / p = 0).
    out2 = q2 + jnp.dot(u2.astype(cdt), wo_ref[...],
                        preferred_element_type=jnp.float32) + bo_ref[...]
    out_ref[...] = out2.reshape(Bt, S, D)


def _choose_block_b(B, S, target_m=512):
    """Largest divisor of B with block_b*S <= target_m, keeping >= 2 grid steps."""
    best = 1
    for d in range(1, B + 1):
        if B % d == 0 and d * S <= target_m:
            best = d
    if B // best < 2:  # keep the grid >= 2 parallel steps (v7x has 2 TCs/chip)
        for d in range(best - 1, 0, -1):
            if B % d == 0 and B // d >= 2:
                best = d
                break
    return best


def additive_attention(x_q, x_kv, params, *, compute_dtype=jnp.bfloat16,
                       block_b=None, interpret=False):
    """params: pre-transposed weights (in,out) and biases reshaped (1,out)."""
    B, S, D = x_q.shape
    H = params["wWq"].shape[1]
    hd = D // H
    if block_b is None:
        block_b = _choose_block_b(B, S)
    assert B % block_b == 0, "block_b must divide B"
    grid_b = B // block_b
    cdt = compute_dtype

    # Head-expansion matrix E: (H, D), E[h, j] = 1 iff j // head_dim == h.
    # Precomputed once here (hoisted out of the per-grid-step kernel body).
    head_of_lane = jnp.arange(D, dtype=jnp.int32) // hd
    expand = (head_of_lane[None, :] == jnp.arange(H, dtype=jnp.int32)[:, None]
              ).astype(jnp.float32)

    # Fuse the v / k projection weights (hoisted concat).
    wvk = jnp.concatenate([params["wv"], params["wk"]], axis=1)          # (D, 2D)
    bvk = jnp.concatenate([params["bv"], params["bk"]], axis=1)          # (1, 2D)

    def x_spec():
        return pl.BlockSpec((block_b, S, D), lambda b: (b, 0, 0))

    def const_spec(shape):
        n = len(shape)
        return pl.BlockSpec(shape, lambda b, _n=n: (0,) * _n)

    in_specs = [
        x_spec(), x_spec(),
        const_spec((H, D)),                              # expand
        const_spec((D, D)), const_spec((1, D)),          # q_proj
        const_spec((D, 2 * D)), const_spec((1, 2 * D)),  # fused v/k proj
        const_spec((D, H)), const_spec((1, H)),          # W_q
        const_spec((D, H)), const_spec((1, H)),          # W_k
        const_spec((D, D)), const_spec((1, D)),          # r_out
    ]
    out_specs = [
        pl.BlockSpec((block_b, S, D), lambda b: (b, 0, 0)),
        pl.BlockSpec((block_b, S, H), lambda b: (b, 0, 0)),
        pl.BlockSpec((block_b, S, H), lambda b: (b, 0, 0)),
    ]
    out_shape = (
        jax.ShapeDtypeStruct((B, S, D), jnp.float32),
        jax.ShapeDtypeStruct((B, S, H), jnp.float32),
        jax.ShapeDtypeStruct((B, S, H), jnp.float32),
    )

    # Rough VMEM budget: weights (grid-invariant) + double-buffered activation
    # blocks + outputs + f32 intermediates, generous headroom, capped at 64 MiB
    # (v7x physical VMEM per TensorCore).
    isz = jnp.dtype(cdt).itemsize
    w_bytes = (2 * D * D + 2 * D * D + 2 * D * H) * isz \
              + (4 * D + 2 * H) * 4 + H * D * 4
    x_bytes = 2 * 2 * block_b * S * D * isz
    o_bytes = 2 * block_b * S * (D + 2 * H) * 4
    tmp_bytes = 14 * block_b * S * D * 4
    vmem_limit = int(min(64 << 20,
                         max(16 << 20, 2 * (w_bytes + x_bytes + o_bytes + tmp_bytes))))

    grid_spec = pltpu.PrefetchScalarGridSpec(
        num_scalar_prefetch=0,
        grid=(grid_b,),
        in_specs=in_specs,
        out_specs=out_specs,
    )

    return pl.pallas_call(
        _additive_attention_kernel,
        grid_spec=grid_spec,
        out_shape=out_shape,
        compiler_params=pltpu.CompilerParams(
            dimension_semantics=("parallel",),
            vmem_limit_bytes=vmem_limit,
        ),
        interpret=interpret,
    )(
        x_q.astype(cdt), x_kv.astype(cdt), expand,
        params["wq"].astype(cdt), params["bq"],
        wvk.astype(cdt), bvk,
        params["wWq"].astype(cdt), params["bWq"],
        params["wWk"].astype(cdt), params["bWk"],
        params["wo"].astype(cdt), params["bo"],
    )


def additive_attention_ref(x_q, x_kv, params, n_heads):
    """Pure-JAX f32 reference matching the PyTorch forward (eval mode)."""
    B, Sq, D = x_q.shape
    hd = D // n_heads
    q = x_q @ params["wq"] + params["bq"]
    v = x_kv @ params["wv"] + params["bv"]
    k = x_kv @ params["wk"] + params["bk"]
    alphas = jax.nn.softmax((q @ params["wWq"] + params["bWq"]) / math.sqrt(hd), axis=1)
    q_r = q.reshape(B, Sq, n_heads, hd)
    gq = jnp.einsum("bsh,bshd->bhd", alphas, q_r).reshape(B, 1, D)
    p = k * gq
    betas = jax.nn.softmax((p @ params["wWk"] + params["bWk"]) / math.sqrt(hd), axis=1)
    p_r = p.reshape(B, -1, n_heads, hd)
    gk = jnp.einsum("bsh,bshd->bhd", betas, p_r).reshape(B, 1, D)
    u = v * gk
    out = q + (u @ params["wo"] + params["bo"])
    return out, alphas, betas


def make_params(key, d_token, n_heads):
    ks = jax.random.split(key, 7)
    scale = 1.0 / math.sqrt(d_token)

    def lin(k, din, dout):
        return (jax.random.normal(k, (din, dout), jnp.float32) * scale,
                jnp.zeros((1, dout), jnp.float32))

    wq, bq = lin(ks[0], d_token, d_token)
    wv, bv = lin(ks[1], d_token, d_token)
    wk, bk = lin(ks[2], d_token, d_token)
    wWq, bWq = lin(ks[3], d_token, n_heads)
    wWk, bWk = lin(ks[4], d_token, n_heads)
    wo, bo = lin(ks[5], d_token, d_token)
    return dict(wq=wq, bq=bq, wv=wv, bv=bv, wk=wk, bk=bk,
                wWq=wWq, bWq=bWq, wWk=wWk, bWk=bWk, wo=wo, bo=bo)


if __name__ == "__main__":
    B, S, D, H = 2, 8, 32, 4  # batch, tokens, d_token, n_heads (head_dim = 8)

    key = jax.random.PRNGKey(0)
    kx, kkv, kp = jax.random.split(key, 3)
    x_q = jax.random.normal(kx, (B, S, D), jnp.float32)
    x_kv = jax.random.normal(kkv, (B, S, D), jnp.float32)
    params = make_params(kp, D, H)

    out, alphas, betas = additive_attention(x_q, x_kv, params)
    jax.block_until_ready((out, alphas, betas))

    out_r, alphas_r, betas_r = additive_attention_ref(x_q, x_kv, params, H)
    # bf16 MXU inputs (f32 accumulation) + approx reciprocal -> loosened tolerances.
    assert jnp.allclose(out, out_r, atol=5e-2, rtol=5e-2), "output mismatch"
    assert jnp.allclose(alphas, alphas_r, atol=2e-2, rtol=2e-2), "alphas mismatch"
    assert jnp.allclose(betas, betas_r, atol=2e-2, rtol=2e-2), "betas mismatch"

    print("KERNEL_OK")
</pallas_src>

<mosaic_0001>
module attributes {stable_mosaic.version = 11 : i64} {
  func.func @_additive_attention_kernel(%arg0: i32, %arg1: memref<1x8x32xbf16, #tpu.memory_space<vmem>>, %arg2: memref<1x8x32xbf16, #tpu.memory_space<vmem>>, %arg3: memref<4x32xf32, #tpu.memory_space<vmem>>, %arg4: memref<32x32xbf16, #tpu.memory_space<vmem>>, %arg5: memref<1x32xf32, #tpu.memory_space<vmem>>, %arg6: memref<32x64xbf16, #tpu.memory_space<vmem>>, %arg7: memref<1x64xf32, #tpu.memory_space<vmem>>, %arg8: memref<32x4xbf16, #tpu.memory_space<vmem>>, %arg9: memref<1x4xf32, #tpu.memory_space<vmem>>, %arg10: memref<32x4xbf16, #tpu.memory_space<vmem>>, %arg11: memref<1x4xf32, #tpu.memory_space<vmem>>, %arg12: memref<32x32xbf16, #tpu.memory_space<vmem>>, %arg13: memref<1x32xf32, #tpu.memory_space<vmem>>, %arg14: memref<1x8x32xf32, #tpu.memory_space<vmem>>, %arg15: memref<1x8x4xf32, #tpu.memory_space<vmem>>, %arg16: memref<1x8x4xf32, #tpu.memory_space<vmem>>) attributes {dimension_semantics = [#tpu.dimension_semantics<parallel>], iteration_bounds = array<i64: 2>, scalar_prefetch = 0 : i64, scratch_operands = 0 : i64, tpu.core_type = #tpu.core_type<tc>, window_params = [{transform_indices = @transform_0, window_bounds = array<i64: 1, 8, 32>}, {transform_indices = @transform_1, window_bounds = array<i64: 1, 8, 32>}, {pipeline_mode = #tpu.pipeline_mode<synchronous>, transform_indices = @transform_2, window_bounds = array<i64: 4, 32>}, {pipeline_mode = #tpu.pipeline_mode<synchronous>, transform_indices = @transform_3, window_bounds = array<i64: 32, 32>}, {pipeline_mode = #tpu.pipeline_mode<synchronous>, transform_indices = @transform_4, window_bounds = array<i64: 1, 32>}, {pipeline_mode = #tpu.pipeline_mode<synchronous>, transform_indices = @transform_5, window_bounds = array<i64: 32, 64>}, {pipeline_mode = #tpu.pipeline_mode<synchronous>, transform_indices = @transform_6, window_bounds = array<i64: 1, 64>}, {pipeline_mode = #tpu.pipeline_mode<synchronous>, transform_indices = @transform_7, window_bounds = array<i64: 32, 4>}, {pipeline_mode = #tpu.pipeline_mode<synchronous>, transform_indices = @transform_8, window_bounds = array<i64: 1, 4>}, {pipeline_mode = #tpu.pipeline_mode<synchronous>, transform_indices = @transform_9, window_bounds = array<i64: 32, 4>}, {pipeline_mode = #tpu.pipeline_mode<synchronous>, transform_indices = @transform_10, window_bounds = array<i64: 1, 4>}, {pipeline_mode = #tpu.pipeline_mode<synchronous>, transform_indices = @transform_11, window_bounds = array<i64: 32, 32>}, {pipeline_mode = #tpu.pipeline_mode<synchronous>, transform_indices = @transform_12, window_bounds = array<i64: 1, 32>}, {transform_indices = @transform_13, window_bounds = array<i64: 1, 8, 32>}, {transform_indices = @transform_14, window_bounds = array<i64: 1, 8, 4>}, {transform_indices = @transform_15, window_bounds = array<i64: 1, 8, 4>}]} {
    %c0 = arith.constant 0 : index
    %c0_0 = arith.constant 0 : index
    %c0_1 = arith.constant 0 : index
    %0 = vector.load %arg1[%c0, %c0_0, %c0_1] : memref<1x8x32xbf16, #tpu.memory_space<vmem>>, vector<1x8x32xbf16>
    %1 = vector.shape_cast %0 : vector<1x8x32xbf16> to vector<8x32xbf16>
    %c0_2 = arith.constant 0 : index
    %c0_3 = arith.constant 0 : index
    %c0_4 = arith.constant 0 : index
    %2 = vector.load %arg2[%c0_2, %c0_3, %c0_4] : memref<1x8x32xbf16, #tpu.memory_space<vmem>>, vector<1x8x32xbf16>
    %3 = vector.shape_cast %2 : vector<1x8x32xbf16> to vector<8x32xbf16>
    %c0_5 = arith.constant 0 : index
    %c0_6 = arith.constant 0 : index
    %4 = vector.load %arg3[%c0_5, %c0_6] : memref<4x32xf32, #tpu.memory_space<vmem>>, vector<4x32xf32>
    %c0_7 = arith.constant 0 : index
    %c0_8 = arith.constant 0 : index
    %5 = vector.load %arg4[%c0_7, %c0_8] : memref<32x32xbf16, #tpu.memory_space<vmem>>, vector<32x32xbf16>
    %cst = arith.constant dense<0.000000e+00> : vector<8x32xf32>
    %6 = tpu.matmul %1, %5, %cst {dimension_numbers = #tpu.dot_dimension_numbers<[1], [0], [0], [1], [0, 0, 1, 1], [], []>} : vector<8x32xbf16>, vector<32x32xbf16>, vector<8x32xf32> -> vector<8x32xf32>
    %c0_9 = arith.constant 0 : index
    %c0_10 = arith.constant 0 : index
    %7 = vector.load %arg5[%c0_9, %c0_10] : memref<1x32xf32, #tpu.memory_space<vmem>>, vector<1x32xf32>
    %8 = vector.broadcast %7 : vector<1x32xf32> to vector<8x32xf32>
    %9 = arith.addf %6, %8 : vector<8x32xf32>
    %c0_11 = arith.constant 0 : index
    %c0_12 = arith.constant 0 : index
    %10 = vector.load %arg6[%c0_11, %c0_12] : memref<32x64xbf16, #tpu.memory_space<vmem>>, vector<32x64xbf16>
    %cst_13 = arith.constant dense<0.000000e+00> : vector<8x64xf32>
    %11 = tpu.matmul %3, %10, %cst_13 {dimension_numbers = #tpu.dot_dimension_numbers<[1], [0], [0], [1], [0, 0, 1, 1], [], []>} : vector<8x32xbf16>, vector<32x64xbf16>, vector<8x64xf32> -> vector<8x64xf32>
    %c0_14 = arith.constant 0 : index
    %c0_15 = arith.constant 0 : index
    %12 = vector.load %arg7[%c0_14, %c0_15] : memref<1x64xf32, #tpu.memory_space<vmem>>, vector<1x64xf32>
    %13 = vector.broadcast %12 : vector<1x64xf32> to vector<8x64xf32>
    %14 = arith.addf %11, %13 : vector<8x64xf32>
    %15 = vector.extract_strided_slice %14 {offsets = [0, 0], sizes = [8, 32], strides = [1, 1]} : vector<8x64xf32> to vector<8x32xf32>
    %16 = vector.extract_strided_slice %14 {offsets = [0, 32], sizes = [8, 32], strides = [1, 1]} : vector<8x64xf32> to vector<8x32xf32>
    %17 = arith.truncf %9 : vector<8x32xf32> to vector<8x32xbf16>
    %c0_16 = arith.constant 0 : index
    %c0_17 = arith.constant 0 : index
    %18 = vector.load %arg8[%c0_16, %c0_17] : memref<32x4xbf16, #tpu.memory_space<vmem>>, vector<32x4xbf16>
    %cst_18 = arith.constant dense<0.000000e+00> : vector<8x4xf32>
    %19 = tpu.matmul %17, %18, %cst_18 {dimension_numbers = #tpu.dot_dimension_numbers<[1], [0], [0], [1], [0, 0, 1, 1], [], []>} : vector<8x32xbf16>, vector<32x4xbf16>, vector<8x4xf32> -> vector<8x4xf32>
    %c0_19 = arith.constant 0 : index
    %c0_20 = arith.constant 0 : index
    %20 = vector.load %arg9[%c0_19, %c0_20] : memref<1x4xf32, #tpu.memory_space<vmem>>, vector<1x4xf32>
    %21 = vector.broadcast %20 : vector<1x4xf32> to vector<8x4xf32>
    %22 = arith.addf %19, %21 : vector<8x4xf32>
    %cst_21 = arith.constant 0.353553385 : f32
    %23 = vector.broadcast %cst_21 : f32 to vector<8x4xf32>
    %24 = arith.mulf %22, %23 : vector<8x4xf32>
    %25 = vector.shape_cast %24 : vector<8x4xf32> to vector<1x8x4xf32>
    %cst_22 = arith.constant dense<0xFF800000> : vector<1x4xf32>
    %26 = vector.multi_reduction <maximumf>, %25, %cst_22 [1] : vector<1x8x4xf32> to vector<1x4xf32>
    %27 = vector.shape_cast %26 : vector<1x4xf32> to vector<1x1x4xf32>
    %28 = vector.broadcast %27 : vector<1x1x4xf32> to vector<1x8x4xf32>
    %29 = arith.subf %25, %28 : vector<1x8x4xf32>
    %30 = math.exp %29 : vector<1x8x4xf32>
    %cst_23 = arith.constant dense<0.000000e+00> : vector<1x4xf32>
    %31 = vector.multi_reduction <add>, %30, %cst_23 [1] : vector<1x8x4xf32> to vector<1x4xf32>
    %32 = vector.shape_cast %31 : vector<1x4xf32> to vector<1x1x4xf32>
    %33 = tpu.reciprocal %32 {approx = true} : vector<1x1x4xf32> -> vector<1x1x4xf32>
    %34 = vector.broadcast %33 : vector<1x1x4xf32> to vector<1x8x4xf32>
    %35 = arith.mulf %30, %34 : vector<1x8x4xf32>
    %c0_24 = arith.constant 0 : index
    %c0_25 = arith.constant 0 : index
    %c0_26 = arith.constant 0 : index
    %36 = vector.load %arg15[%c0_24, %c0_25, %c0_26] : memref<1x8x4xf32, #tpu.memory_space<vmem>>, vector<1x8x4xf32>
    tpu.vector_store %arg15[%c0_24, %c0_25, %c0_26], %35 {strides = array<i32>} : memref<1x8x4xf32, #tpu.memory_space<vmem>>, vector<1x8x4xf32>,
    %37 = vector.shape_cast %35 : vector<1x8x4xf32> to vector<8x4xf32>
    %cst_27 = arith.constant dense<0.000000e+00> : vector<8x32xf32>
    %38 = tpu.matmul %37, %4, %cst_27 {dimension_numbers = #tpu.dot_dimension_numbers<[1], [0], [0], [1], [0, 0, 1, 1], [], []>} : vector<8x4xf32>, vector<4x32xf32>, vector<8x32xf32> -> vector<8x32xf32>
    %39 = vector.shape_cast %38 : vector<8x32xf32> to vector<1x8x32xf32>
    %40 = vector.shape_cast %9 : vector<8x32xf32> to vector<1x8x32xf32>
    %41 = arith.mulf %39, %40 : vector<1x8x32xf32>
    %cst_28 = arith.constant dense<0.000000e+00> : vector<1x32xf32>
    %42 = vector.multi_reduction <add>, %41, %cst_28 [1] : vector<1x8x32xf32> to vector<1x32xf32>
    %43 = vector.shape_cast %42 : vector<1x32xf32> to vector<1x1x32xf32>
    %44 = vector.shape_cast %16 : vector<8x32xf32> to vector<1x8x32xf32>
    %45 = vector.broadcast %43 : vector<1x1x32xf32> to vector<1x8x32xf32>
    %46 = arith.mulf %44, %45 : vector<1x8x32xf32>
    %47 = vector.shape_cast %46 : vector<1x8x32xf32> to vector<8x32xf32>
    %48 = arith.truncf %47 : vector<8x32xf32> to vector<8x32xbf16>
    %c0_29 = arith.constant 0 : index
    %c0_30 = arith.constant 0 : index
    %49 = vector.load %arg10[%c0_29, %c0_30] : memref<32x4xbf16, #tpu.memory_space<vmem>>, vector<32x4xbf16>
    %cst_31 = arith.constant dense<0.000000e+00> : vector<8x4xf32>
    %50 = tpu.matmul %48, %49, %cst_31 {dimension_numbers = #tpu.dot_dimension_numbers<[1], [0], [0], [1], [0, 0, 1, 1], [], []>} : vector<8x32xbf16>, vector<32x4xbf16>, vector<8x4xf32> -> vector<8x4xf32>
    %c0_32 = arith.constant 0 : index
    %c0_33 = arith.constant 0 : index
    %51 = vector.load %arg11[%c0_32, %c0_33] : memref<1x4xf32, #tpu.memory_space<vmem>>, vector<1x4xf32>
    %52 = vector.broadcast %51 : vector<1x4xf32> to vector<8x4xf32>
    %53 = arith.addf %50, %52 : vector<8x4xf32>
    %cst_34 = arith.constant 0.353553385 : f32
    %54 = vector.broadcast %cst_34 : f32 to vector<8x4xf32>
    %55 = arith.mulf %53, %54 : vector<8x4xf32>
    %56 = vector.shape_cast %55 : vector<8x4xf32> to vector<1x8x4xf32>
    %cst_35 = arith.constant dense<0xFF800000> : vector<1x4xf32>
    %57 = vector.multi_reduction <maximumf>, %56, %cst_35 [1] : vector<1x8x4xf32> to vector<1x4xf32>
    %58 = vector.shape_cast %57 : vector<1x4xf32> to vector<1x1x4xf32>
    %59 = vector.broadcast %58 : vector<1x1x4xf32> to vector<1x8x4xf32>
    %60 = arith.subf %56, %59 : vector<1x8x4xf32>
    %61 = math.exp %60 : vector<1x8x4xf32>
    %cst_36 = arith.constant dense<0.000000e+00> : vector<1x4xf32>
    %62 = vector.multi_reduction <add>, %61, %cst_36 [1] : vector<1x8x4xf32> to vector<1x4xf32>
    %63 = vector.shape_cast %62 : vector<1x4xf32> to vector<1x1x4xf32>
    %64 = tpu.reciprocal %63 {approx = true} : vector<1x1x4xf32> -> vector<1x1x4xf32>
    %65 = vector.broadcast %64 : vector<1x1x4xf32> to vector<1x8x4xf32>
    %66 = arith.mulf %61, %65 : vector<1x8x4xf32>
    %c0_37 = arith.constant 0 : index
    %c0_38 = arith.constant 0 : index
    %c0_39 = arith.constant 0 : index
    %67 = vector.load %arg16[%c0_37, %c0_38, %c0_39] : memref<1x8x4xf32, #tpu.memory_space<vmem>>, vector<1x8x4xf32>
    tpu.vector_store %arg16[%c0_37, %c0_38, %c0_39], %66 {strides = array<i32>} : memref<1x8x4xf32, #tpu.memory_space<vmem>>, vector<1x8x4xf32>,
    %68 = vector.shape_cast %66 : vector<1x8x4xf32> to vector<8x4xf32>
    %cst_40 = arith.constant dense<0.000000e+00> : vector<8x32xf32>
    %69 = tpu.matmul %68, %4, %cst_40 {dimension_numbers = #tpu.dot_dimension_numbers<[1], [0], [0], [1], [0, 0, 1, 1], [], []>} : vector<8x4xf32>, vector<4x32xf32>, vector<8x32xf32> -> vector<8x32xf32>
    %70 = vector.shape_cast %69 : vector<8x32xf32> to vector<1x8x32xf32>
    %71 = arith.mulf %70, %46 : vector<1x8x32xf32>
    %cst_41 = arith.constant dense<0.000000e+00> : vector<1x32xf32>
    %72 = vector.multi_reduction <add>, %71, %cst_41 [1] : vector<1x8x32xf32> to vector<1x32xf32>
    %73 = vector.shape_cast %72 : vector<1x32xf32> to vector<1x1x32xf32>
    %74 = vector.shape_cast %15 : vector<8x32xf32> to vector<1x8x32xf32>
    %75 = vector.broadcast %73 : vector<1x1x32xf32> to vector<1x8x32xf32>
    %76 = arith.mulf %74, %75 : vector<1x8x32xf32>
    %77 = vector.shape_cast %76 : vector<1x8x32xf32> to vector<8x32xf32>
    %78 = arith.truncf %77 : vector<8x32xf32> to vector<8x32xbf16>
    %c0_42 = arith.constant 0 : index
    %c0_43 = arith.constant 0 : index
    %79 = vector.load %arg12[%c0_42, %c0_43] : memref<32x32xbf16, #tpu.memory_space<vmem>>, vector<32x32xbf16>
    %cst_44 = arith.constant dense<0.000000e+00> : vector<8x32xf32>
    %80 = tpu.matmul %78, %79, %cst_44 {dimension_numbers = #tpu.dot_dimension_numbers<[1], [0], [0], [1], [0, 0, 1, 1], [], []>} : vector<8x32xbf16>, vector<32x32xbf16>, vector<8x32xf32> -> vector<8x32xf32>
    %81 = arith.addf %9, %80 : vector<8x32xf32>
    %c0_45 = arith.constant 0 : index
    %c0_46 = arith.constant 0 : index
    %82 = vector.load %arg13[%c0_45, %c0_46] : memref<1x32xf32, #tpu.memory_space<vmem>>, vector<1x32xf32>
    %83 = vector.broadcast %82 : vector<1x32xf32> to vector<8x32xf32>
    %84 = arith.addf %81, %83 : vector<8x32xf32>
    %85 = vector.shape_cast %84 : vector<8x32xf32> to vector<1x8x32xf32>
    %c0_47 = arith.constant 0 : index
    %c0_48 = arith.constant 0 : index
    %c0_49 = arith.constant 0 : index
    %86 = vector.load %arg14[%c0_47, %c0_48, %c0_49] : memref<1x8x32xf32, #tpu.memory_space<vmem>>, vector<1x8x32xf32>
    tpu.vector_store %arg14[%c0_47, %c0_48, %c0_49], %85 {strides = array<i32>} : memref<1x8x32xf32, #tpu.memory_space<vmem>>, vector<1x8x32xf32>,
    return
  }
  func.func @transform_0(%arg0: i32) -> (i32, i32, i32) {
    %c0_i32 = arith.constant 0 : i32
    %c0_i32_0 = arith.constant 0 : i32
    %c0_i32_1 = arith.constant 0 : i32
    return %arg0, %c0_i32, %c0_i32_0 : i32, i32, i32
  }
  func.func @transform_1(%arg0: i32) -> (i32, i32, i32) {
    %c0_i32 = arith.constant 0 : i32
    %c0_i32_0 = arith.constant 0 : i32
    %c0_i32_1 = arith.constant 0 : i32
    return %arg0, %c0_i32, %c0_i32_0 : i32, i32, i32
  }
  func.func @transform_2(%arg0: i32) -> (i32, i32) {
    %c0_i32 = arith.constant 0 : i32
    %c0_i32_0 = arith.constant 0 : i32
    %c0_i32_1 = arith.constant 0 : i32
    return %c0_i32, %c0_i32_0 : i32, i32
  }
  func.func @transform_3(%arg0: i32) -> (i32, i32) {
    %c0_i32 = arith.constant 0 : i32
    %c0_i32_0 = arith.constant 0 : i32
    %c0_i32_1 = arith.constant 0 : i32
    return %c0_i32, %c0_i32_0 : i32, i32
  }
  func.func @transform_4(%arg0: i32) -> (i32, i32) {
    %c0_i32 = arith.constant 0 : i32
    %c0_i32_0 = arith.constant 0 : i32
    %c0_i32_1 = arith.constant 0 : i32
    return %c0_i32, %c0_i32_0 : i32, i32
  }
  func.func @transform_5(%arg0: i32) -> (i32, i32) {
    %c0_i32 = arith.constant 0 : i32
    %c0_i32_0 = arith.constant 0 : i32
    %c0_i32_1 = arith.constant 0 : i32
    return %c0_i32, %c0_i32_0 : i32, i32
  }
  func.func @transform_6(%arg0: i32) -> (i32, i32) {
    %c0_i32 = arith.constant 0 : i32
    %c0_i32_0 = arith.constant 0 : i32
    %c0_i32_1 = arith.constant 0 : i32
    return %c0_i32, %c0_i32_0 : i32, i32
  }
  func.func @transform_7(%arg0: i32) -> (i32, i32) {
    %c0_i32 = arith.constant 0 : i32
    %c0_i32_0 = arith.constant 0 : i32
    %c0_i32_1 = arith.constant 0 : i32
    return %c0_i32, %c0_i32_0 : i32, i32
  }
  func.func @transform_8(%arg0: i32) -> (i32, i32) {
    %c0_i32 = arith.constant 0 : i32
    %c0_i32_0 = arith.constant 0 : i32
    %c0_i32_1 = arith.constant 0 : i32
    return %c0_i32, %c0_i32_0 : i32, i32
  }
  func.func @transform_9(%arg0: i32) -> (i32, i32) {
    %c0_i32 = arith.constant 0 : i32
    %c0_i32_0 = arith.constant 0 : i32
    %c0_i32_1 = arith.constant 0 : i32
    return %c0_i32, %c0_i32_0 : i32, i32
  }
  func.func @transform_10(%arg0: i32) -> (i32, i32) {
    %c0_i32 = arith.constant 0 : i32
    %c0_i32_0 = arith.constant 0 : i32
    %c0_i32_1 = arith.constant 0 : i32
    return %c0_i32, %c0_i32_0 : i32, i32
  }
  func.func @transform_11(%arg0: i32) -> (i32, i32) {
    %c0_i32 = arith.constant 0 : i32
    %c0_i32_0 = arith.constant 0 : i32
    %c0_i32_1 = arith.constant 0 : i32
    return %c0_i32, %c0_i32_0 : i32, i32
  }
  func.func @transform_12(%arg0: i32) -> (i32, i32) {
    %c0_i32 = arith.constant 0 : i32
    %c0_i32_0 = arith.constant 0 : i32
    %c0_i32_1 = arith.constant 0 : i32
    return %c0_i32, %c0_i32_0 : i32, i32
  }
  func.func @transform_13(%arg0: i32) -> (i32, i32, i32) {
    %c0_i32 = arith.constant 0 : i32
    %c0_i32_0 = arith.constant 0 : i32
    %c0_i32_1 = arith.constant 0 : i32
    return %arg0, %c0_i32, %c0_i32_0 : i32, i32, i32
  }
  func.func @transform_14(%arg0: i32) -> (i32, i32, i32) {
    %c0_i32 = arith.constant 0 : i32
    %c0_i32_0 = arith.constant 0 : i32
    %c0_i32_1 = arith.constant 0 : i32
    return %arg0, %c0_i32, %c0_i32_0 : i32, i32, i32
  }
  func.func @transform_15(%arg0: i32) -> (i32, i32, i32) {
    %c0_i32 = arith.constant 0 : i32
    %c0_i32_0 = arith.constant 0 : i32
    %c0_i32_1 = arith.constant 0 : i32
    return %arg0, %c0_i32, %c0_i32_0 : i32, i32, i32
  }
}

</mosaic_0001>

<bundles_post_ra>
// kernel: tpu_custom_call.1
= control target key start
LH: loop header
LB: loop body
LE: loop exit
PB: predicated region body
PF: predicated region fallthrough
CT: control target
= control target key end

     0   :  { %s1813_s0 = inlined_call_operand.hbm [shape: bf16[2,8,32], index: 0, kind: input, shape index: {}]   ;;  %s1814_s1 = inlined_call_operand.hbm [shape: bf16[2,8,32], index: 1, kind: input, shape index: {}]   ;;  %s1815_s2 = inlined_call_operand.hbm [shape: f32[4,32], index: 2, kind: input, shape index: {}]   ;;  %s1816_s3 = inlined_call_operand.vmem [shape: bf16[32,32], index: 3, kind: input, shape index: {}]   ;;  %s1817_s4 = inlined_call_operand.vmem [shape: f32[1,32], index: 4, kind: input, shape index: {}]   ;;  %s1818_s5 = inlined_call_operand.vmem [shape: bf16[32,64], index: 5, kind: input, shape index: {}]   ;;  %s1819_s6 = inlined_call_operand.vmem [shape: f32[1,64], index: 6, kind: input, shape index: {}]   ;;  %s1820_s7 = inlined_call_operand.vmem [shape: bf16[32,4], index: 7, kind: input, shape index: {}]   ;;  %s1821_s8 = inlined_call_operand.vmem [shape: f32[1,4], index: 8, kind: input, shape index: {}]   ;;  %s1822_s9 = inlined_call_operand.vmem [shape: bf16[32,4], index: 9, kind: input, shape index: {}]   ;;  %s1823_s10 = inlined_call_operand.vmem [shape: f32[1,4], index: 10, kind: input, shape index: {}]   ;;  %s1824_s11 = inlined_call_operand.hbm [shape: bf16[32,32], index: 11, kind: input, shape index: {}]   ;;  %s1825_s12 = inlined_call_operand.vmem [shape: f32[1,32], index: 12, kind: input, shape index: {}]   ;;  %s1826_s13 = inlined_call_operand.hbm [shape: f32[2,8,32], index: 13, kind: output, shape index: {0}]   ;;  %s1827_s14 = inlined_call_operand.vmem [shape: f32[2,8,4], index: 14, kind: output, shape index: {1}]   ;;  %s1828_s15 = inlined_call_operand.vmem [shape: f32[2,8,4], index: 15, kind: output, shape index: {2}]  }
   0x1   :  { %1838 = sst [smem:[#allocation23_spill]] %s1815_s2 }
   0x2   :  { %1839 = sst [smem:[#allocation24_spill]] %s1819_s6 }
   0x3   :  { %1840 = sst [smem:[#allocation25_spill]] %s1823_s10 }
   0x4   :  { %1841 = sst [smem:[#allocation26_spill]] %s1824_s11 }
   0x5   :  { %1842 = sst [smem:[#allocation27_spill]] %s1825_s12 }
   0x6   :  { %1843 = sst [smem:[#allocation28_spill]] %s1826_s13 }
   0x7   :  { %1844 = sst [smem:[#allocation29_spill]] %s1828_s15 }
   0x8   :  { %21 = vsyncpa [#allocation3], 0 }
   0x9   :  { %23 = vsyncpa [#allocation3 + $0x1], 0 }
   0xa   :  { %24 = vsyncpa [#allocation6], 0 }
   0xb   :  { %26 = vsyncpa [#allocation6 + $0x1], 0 }
   0xc   :  { %27 = vsyncpa [#allocation9], 0 }
   0xd   :  { %28 = vsyncpa [#allocation4], 0 }
   0xe   :  { %30 = vsyncpa [#allocation4 + $0x1], 0  ;;  %s1561_s18 = smov 0   ;;  %s1563_s19 = smov 0  }
   0xf   :  { %s1565_s20 = smov 0   ;;  %s1567_s21 = smov 0  }
  0x10 LB: > { %1845 = sst [smem:[#allocation16_spill]] %s1461_s18  ;;  %s1582_s22 = sadd.s32 4294967295, %s1473_s21   ;;  %s1473_s21 = sphi %s1567_s21, %s1869_s21   ;;  %s1469_s20 = sphi %s1565_s20, %s1871_s20   ;;  %s1465_s19 = sphi %s1563_s19, %s1873_s19   ;;  %s1461_s18 = sphi %s1561_s18, %s1872_s18  }
  0x11   : > { %1846 = sst [smem:[#allocation17_spill]] %s1469_s20  ;;  %s1106_s23 = sadd.s32 4294967294, %s1473_s21  }
  0x12   : > { %1847 = sst [smem:[#allocation18_spill]] %s1473_s21  ;;  %p56_p0 = scmp.ne.s32.totalorder %s1465_s19, %s1461_s18 }
  0x13   : > { %p57_p1 = scmp.eq.s32.totalorder %s1582_s22, 0  ;;  %p337_p2 = scmp.eq.s32.totalorder %s1582_s22, 1 }
  0x14   : > { %p343_p3 = scmp.eq.s32.totalorder %s1106_s23, 1  ;;  %p1107_p5 = scmp.ge.s32.totalorder %s1473_s21, 1 }
  0x15   : > { %p1591_p4 = por %p57_p1, %p56_p0  ;;  %p402_p7 = scmp.lt.s32.totalorder %s1473_s21, 3 }
  0x16   : > { %p1596_p6 = por %p343_p3, %p56_p0  ;;  %s1851_s2 = sld [smem:[#allocation23_spill]] }
  0x17   : > { %p1604_p8 = pnand %p1107_p5, %p402_p7  ;;  %s1475_s30 = smov [#allocation7]  }
  0x18   : > { %s1849_s25 = scalar_select %p1596_p6, 1, 0 }
  0x19   : > { %p1200_p10 = pneg %p1604_p8  ;;  %s416_s16 = sshll.u32 %s1475_s30, 4  ;;  %s417_s16 = int_to_ptr.vmem [resolvable:$true] %s416_s16 }
  0x1a   : > { %1850 = sst [smem:[#allocation19_spill]] %s1849_s25  ;;  %s1476_s27 = smov [#allocation8]  }
  0x1b   : > { %s1853_s11 = sld [smem:[#allocation26_spill]]  ;;  %p1201_p11 = pnand %p1200_p10, %p57_p1 }
  0x1c   : > { %s414_s28 = sshll.u32 %s1851_s2, 4  ;;  %s451_s2 = sshll.u32 %s1476_s27, 4  ;;  %s415_s28 = int_to_ptr.hbm [resolvable:$true] %s414_s28  ;;  %s452_s2 = int_to_ptr.vmem [resolvable:$true] %s451_s2 }
  0x1d   : > { %1203 = dma.hbm_to_vmem [thread:$0]  (!%p1201_p11), %s415_s28, 64, %s417_s16, [#allocation6]  }
  0x1e   : > { %s1477_s30 = smov 64   ;;  %s1478_s25 = smov 4  }
  0x1f   : > { %s1617_s18 = sadd.s32 1, %s1473_s21   ;;  %s43_s23 = sadd.s32 1, %s1469_s20 }
  0x20   : > { %1854 = sst [smem:[#allocation20_spill]] %s1617_s18  ;;  %s40_s17 = ssub.s32 %s1473_s21, %s1617_s18 }
  0x21   : > { %s449_s26 = sshll.u32 %s1853_s11, 4  ;;  %p41_p12 = scmp.eq.s32.totalorder %s40_s17, 0  ;;  %s450_s26 = int_to_ptr.hbm [resolvable:$true] %s449_s26 }
  0x22   : > { %1206 = dma.hbm_to_vmem [thread:$0]  (!%p1201_p11), %s450_s26, 256, %s452_s2, [#allocation9], %s1477_s30, %s1477_s30, %s1478_s25  }
  0x23   : > { %p50_p13 = scmp.ne.s32.totalorder %s1469_s20, %s1465_s19  ;;  %p51_p0 = scmp.eq.s32.totalorder %s1473_s21, 0 }
  0x24   : > { %s1626_s11 = scalar_select %p41_p12, %s1469_s20, %s43_s23  }
  0x25   : > { %p52_p3 = por %p51_p0, %p50_p13  ;;  %p1630_p5 = por %p337_p2, %p50_p13 }
  0x26   : > { %1855 = sst [smem:[#allocation21_spill]] %s1626_s11  ;;  %p1220_p7 = scmp.lt.s32.totalorder %s1473_s21, 2 }
  0x27   : > { %s1856_s28 = scalar_select %p1630_p5, 1, 0 }
  0x28   : > { %s468_s16 = sand.u32 1, %s1469_s20   ;;  %s1112_s25 = sshll.u32 %s1473_s21, 2 }
  0x29   : > { %1857 = sst [smem:[#allocation22_spill]] %s1856_s28  ;;  %s1636_s2 = sshll.u32 %s468_s16, 2 }
  0x2a   : > { %s476_s30 = scalar_lea.hbm %s1813_s0, %s1112_s25  ;;  %s472_s17 = scalar_lea.vmem [#allocation2], %s1636_s2 }
  0x2b   : > { %s480_s18 = sshll.u32 %s472_s17, 4  ;;  %s478_s23 = sshll.u32 %s476_s30, 4  ;;  %s481_s18 = int_to_ptr.vmem [resolvable:$true] %s480_s18  ;;  %s479_s23 = int_to_ptr.hbm [resolvable:$true] %s478_s23 }
  0x2c   : > { %p1643_p10 = pnand %p1220_p7, %p52_p3  ;;  %s495_s20 = scalar_lea.hbm %s1814_s1, %s1112_s25 }
  0x2d   : > { %s487_s13 = sand.u32 1, %s1473_s21   ;;  %s469_s15 = scalar_lea.sflag [#allocation3], %s468_s16 }
  0x2e   : > { %s1335_s10 = sshra.s32 %s479_s23, 4  ;;  %p1339_p11 = pneg %p1643_p10  ;;  %s1336_s10 = int_to_ptr.hbm [resolvable:$true] %s1335_s10 }
  0x2f   : > { %s1337_s26 = scalar_lea.hbm %s1336_s10, 4  ;;  %s1342_s17 = scalar_lea.hbm %s1813_s0, 8 }
  0x30   : > { %p1338_p2 = scmp.ne.s32.totalorder %s1336_s10, %s1337_s26  ;;  %p1343_p0 = scmp.lt.s32.totalorder %s1336_s10, %s1813_s0 }
  0x31   : > { %p1344_p3 = scmp.lt.s32.totalorder %s1342_s17, %s1337_s26 }
  0x32   : > { %p1340_p12 = pnand %p1339_p11, %p1338_p2 }
  0x33   : > { %p1345_p7 = por %p1344_p3, %p1343_p0 }
  0x34   : > { %p1341_p13 = pneg %p1340_p12 }
  0x36   : > { %p1346_p9 = pnand %p1345_p7, %p1341_p13 }
  0x38   : > { %1349 = shalt.err (!%p1346_p9)
}
  0x39   : > { %1210 = dma.hbm_to_vmem [thread:$0]  (!%p1643_p10), %s479_s23, 64, %s481_s18, %s469_s15  }
  0x3a   : > { %s497_s16 = sshll.u32 %s495_s20, 4  ;;  %s491_s25 = scalar_lea.vmem [#allocation5], %s1636_s2  ;;  %s498_s16 = int_to_ptr.hbm [resolvable:$true] %s497_s16 }
  0x3b   : > { %s499_s21 = sshll.u32 %s491_s25, 4  ;;  %s488_s27 = scalar_lea.sflag [#allocation6], %s487_s13  ;;  %s500_s21 = int_to_ptr.vmem [resolvable:$true] %s499_s21 }
  0x3c   : > { %s1365_s30 = sshra.s32 %s498_s16, 4  ;;  %s1372_s17 = scalar_lea.hbm %s1814_s1, 8  ;;  %s1366_s30 = int_to_ptr.hbm [resolvable:$true] %s1365_s30 }
  0x3d   : > { %s1367_s6 = scalar_lea.hbm %s1366_s30, 4  ;;  %p1373_p9 = scmp.lt.s32.totalorder %s1366_s30, %s1814_s1 }
  0x3e   : > { %p1368_p2 = scmp.ne.s32.totalorder %s1366_s30, %s1367_s6  ;;  %p1374_p0 = scmp.lt.s32.totalorder %s1372_s17, %s1367_s6 }
  0x40   : > { %p1370_p12 = pnand %p1368_p2, %p1339_p11  ;;  %p1375_p3 = por %p1374_p0, %p1373_p9 }
  0x42   : > { %p1371_p13 = pneg %p1370_p12 }
  0x44   : > { %p1376_p7 = pnand %p1375_p3, %p1371_p13 }
  0x46   : > { %1379 = shalt.err (!%p1376_p7)
}
  0x47   : > { %1213 = dma.hbm_to_vmem [thread:$0]  (!%p1643_p10), %s498_s16, 64, %s500_s21, %s488_s27  }
  0x48   : > { %508 = sbr.rel (%p1604_p8) target bundleno = 1247 (0x4df), region = 72  ;;  %s1679_s13 = sand.u32 (!%p1604_p8), 1, %s1465_s19  }
  0x49   : > { %s1116_s18 = sshll.u32 (!%p1604_p8), %s1679_s13, 2  ;;  %s511_s20 = scalar_lea.sflag (!%p1604_p8), [#allocation3], %s1679_s13 }
  0x4a   : > { %s514_s2 = scalar_lea.vmem (!%p1604_p8), [#allocation2], %s1116_s18 }
  0x4d   : > { %1440 = dma.done.wait (%p1591_p4), %s511_s20, 64  }
  0x4e   : > { %1442 = vsyncadd (%p1591_p4), %s511_s20, 4294967232  ;;  %s520_s6 = sand.u32 1, %s1582_s22   ;;  %s1688_s21 = scalar_lea.vmem [#allocation5], %s1116_s18 }
  0x4f   : > { %s521_s11 = scalar_lea.sflag [#allocation6], %s520_s6 }
  0x50   : > { %1444 = dma.done.wait (%p1591_p4), %s521_s11, 64  }
  0x51   : > { %1446 = vsyncadd (%p1591_p4), %s521_s11, 4294967232 }
  0x52   : > { %1448 = dma.done.wait (%p57_p1), [#allocation6], 64  }
  0x53   : > { %1450 = vsyncadd (%p57_p1), [#allocation6], 4294967232 }
  0x54   : > { %1452 = dma.done.wait (%p57_p1), [#allocation9], 256  }
  0x55   : > { %1454 = vsyncadd (%p57_p1), [#allocation9], 4294967040  ;;  %v1177_v0 = vld [vmem:[%s1816_s3 + $0x8] sm:$0xff]  ;;  %v1176_v1 = vld [vmem:[%s1816_s3] sm:$0xff]  ;;  %vm627_vm0 = vcmask 261120   ;;  %vm718_vm1 = vcmask 31744  }
  0x56   : > { %v1181_v2 = vld [vmem:[%s1820_s7 + $0x8] sm:$0xff]  ;;  %637 = vmatpush.bf16.msra.mxu0 %v1177_v0  ;;  %v604_v3 = vld [vmem:[%s514_s2] sm:$0xf]  ;;  %v606_v13 = vld [vmem:[#allocation7] sm:$0xf]  ;;  %vm742_vm2 = vcmask 1043456  }
  0x57   : > { %710 = vmatpush.bf16.msra.mxu2 %v1181_v2  ;;  %v1180_v4 = vld [vmem:[%s1820_s7] sm:$0xff]  ;;  %1150 = vmatpush.msk.msra.mxu3 %vm742_vm2, %v606_v13  ;;  %v1179_v24 = vld [vmem:[%s1818_s5 + $0x8] sm:$0xff]  ;;  %p595_p1 = scmp.lt.s32.totalorder %s1582_s22, 1  ;;  %s1479_s28 = smov 32  }
  0x58   : > { %v1262_v5 = vld [vmem:[%s1817_s4] ss:$0 sm:$0xff]  ;;  %673 = vmatpush.bf16.msra.mxu1 %v1179_v24  ;;  %v605_v27 = vld [vmem:[%s1688_s21] sm:$0xf]  ;;  %s1859_s26 = sld [smem:[#allocation24_spill]]  ;;  %s1480_s17 = smov 96  }
  0x59   : > { %v1263_v10 = vld [vmem:[%s1821_s8] ss:$0 sm:$0xff]  ;;  %s1738_s6 = scalar_select %p595_p1, %s1582_s22, 1  ;;  %v1183_v49 = vld [vmem:[%s1822_s9 + $0x8] sm:$0xff] }
  0x5a   : > { %638 = vmatpush.bf16.msra.mxu0 %v1176_v1  ;;  %v1178_v26 = vld [vmem:[%s1818_s5] sm:$0xff]  ;;  %812 = vmatpush.bf16.msrb.mxu3 %v1183_v49  ;;  %s1860_s18 = sld [smem:[#allocation25_spill]] }
  0x5b   : > { %711 = vmatpush.bf16.msra.mxu2 %v1180_v4  ;;  %s1121_s11 = sshll.u32 %s1738_s6, 3  ;;  %v1182_v50 = vld [vmem:[%s1822_s9] sm:$0xff]  ;;  %s1861_s21 = sld [smem:[#allocation29_spill]] }
  0x5c   : > { %674 = vmatpush.bf16.msra.mxu1 %v1178_v26  ;;  %s598_s23 = scalar_lea.vmem %s1827_s14, %s1121_s11  ;;  %s1120_s6 = sshll.u32 %s1679_s13, 3 }
  0x5d   : > { %1131 = vmatmul.msk.bf16.vlgmr.msra.gmra.mxu0 %vm627_vm0, %v604_v3  ;;  %s1862_s16 = sld [smem:[#allocation28_spill]] }
  0x5e   : > { %1161 = vmatpush.msk.msrb.mxu0 %vm742_vm2, %v606_v13  ;;  %813 = vmatpush.bf16.msrb.mxu3 %v1182_v50  ;;  %v1264_v51 = vld [vmem:[%s1859_s26] ss:$0 sm:$0xff]  ;;  %s1863_s30 = sld [smem:[#allocation27_spill]]  ;;  %s582_s26 = scalar_lea.vmem [#allocation10], %s1120_s6 }
  0x5f   : > { %1140 = vmatmul.msk.bf16.vlgmr.msra.gmra.mxu1 %vm627_vm0, %v605_v27 }
  0x60   : > { %v1265_v57 = vld [vmem:[%s1860_s18] ss:$0 sm:$0xff] }
  0x61   : > { %s602_s29 = scalar_lea.vmem %s1861_s21, %s1121_s11  ;;  %s1173_s11 = sshll.u32 %s1582_s22, 3 }
  0x62   : > { %s917_s22 = scalar_lea.sflag [#allocation4], %s1679_s13 }
  0x63   : > { %s935_s24 = scalar_lea.hbm %s1862_s16, %s1173_s11  ;;  %s1415_s21 = scalar_lea.hbm %s1862_s16, 16 }
  0x64   : > { %s939_s12 = sshll.u32 %s935_s24, 4  ;;  %s940_s12 = int_to_ptr.hbm [resolvable:$true] %s939_s12 }
  0x65   : > { %s1409_s15 = sshra.s32 %s940_s12, 4  ;;  %s1410_s15 = int_to_ptr.hbm [resolvable:$true] %s1409_s15 }
  0x66   : > { %s1411_s18 = scalar_lea.hbm %s1410_s15, 8  ;;  %p1416_p11 = scmp.lt.s32.totalorder %s1410_s15, %s1862_s16 }
  0x67   : > { %p1412_p4 = scmp.ne.s32.totalorder %s1410_s15, %s1411_s18  ;;  %p1417_p2 = scmp.lt.s32.totalorder %s1415_s21, %s1411_s18 }
  0x69   : > { %p1413_p8 = pnand %p1412_p4, %p1630_p5  ;;  %p1418_p12 = por %p1417_p2, %p1416_p11 }
  0x6b   : > { %p1414_p10 = pneg %p1413_p8 }
  0x6d   : > { %p1419_p13 = pnand %p1418_p12, %p1414_p10 }
  0xda   : > { %v640_v6 = vpop.f32.mrf.mxu0 }
  0xdb   : > { %v1718_v7 = vadd.f32 %v1262_v5, %v640_v6 }
  0xdc   : > { %v676_v38 = vpop.f32.mrf.mxu1 }
  0xdd   : > { %v680_v8 = vpack.c.bf16 %v1718_v7, %v1718_v7  ;;  %v677_v52 = vadd.f32 %v1264_v51, %v676_v38 }
  0xdf   : > { %1149 = vmatmul.msk.bf16.vlgmr.msra.gmra.mxu2 %vm627_vm0, %v680_v8 }
  0xe2   : > { %v642_v9 = vpop.f32.mrf.mxu0 }
  0xe4   : > { %v678_v39 = vpop.f32.mrf.mxu1 }
 0x162   : > { %v713_v11 = vpop.f32.mrf.mxu2 }
 0x163   : > { %v714_v12 = vadd.f32 %v1263_v10, %v713_v11 }
 0x165   : > { %v717_v14 = vmul.f32 0.35355338, %v714_v12 }
 0x167   : > { %v719_v15 = vsel %vm718_vm1, %v717_v14, -inf }
 0x168   : > { %v720_v16 = vrot.slane %v719_v15, 4 }
 0x16a   : > { %v721_v17 = vmax.f32 %v719_v15, %v720_v16  ;;  %v715_v18 = vpop.f32.mrf.mxu2 }
 0x16b   : > { %v1185_v18 = vld [vmem:[#allocation8 + $0x8] sm:$0xff] }
 0x16c   : > { %v722_v19 = vrot.slane %v721_v17, 2  ;;  %902 = vmatpush.bf16.msrb.mxu1 %v1185_v18 }
 0x16e   : > { %v723_v20 = vmax.f32 %v721_v17, %v722_v19  ;;  %v1184_v19 = vld [vmem:[#allocation8] sm:$0xff] }
 0x170   : > { %v724_v21 = vrot.slane %v723_v20, 1  ;;  %903 = vmatpush.bf16.msrb.mxu1 %v1184_v19 }
 0x172   : > { %v725_v22 = vmax.f32 %v723_v20, %v724_v21 }
 0x174   : > { %v726_v23 = vsub.f32 %v717_v14, %v725_v22 }
 0x176   : > { %v727_v25 = vmul.f32 1.442695, %v726_v23 }
 0x178   : > { %1267 = vpow2.f32 %v727_v25 }
 0x17e   : > { %v1268_v28 = vpop.eup %1267 }
 0x17f   : > { %v729_v29 = vsel %vm718_vm1, %v1268_v28, 0.0 }
 0x180   : > { %v730_v30 = vrot.slane %v729_v29, 4 }
 0x182   : > { %v731_v31 = vadd.f32 %v730_v30, %v729_v29 }
 0x184   : > { %v732_v32 = vrot.slane %v731_v31, 2 }
 0x186   : > { %v733_v33 = vadd.f32 %v732_v32, %v731_v31  ;;  %v1266_v32 = vld [vmem:[%s1863_s30] ss:$0 sm:$0xff] }
 0x188   : > { %v734_v34 = vrot.slane %v733_v33, 1 }
 0x18a   : > { %v735_v35 = vadd.f32 %v734_v34, %v733_v33 }
 0x18c   : > { %1269 = vrcp.f32 %v735_v35 }
 0x192   : > { %v1270_v36 = vpop.eup %1269 }
 0x193   : > { %v737_v37 = vmul.f32 %v1270_v36, %v1268_v28 }
 0x195   : > { %738 = vst.msk [vmem:[%s598_s23] sm:$0xff] %vm718_vm1, %v737_v37  ;;  %1151 = vmatmul.msk.f32.vlgmr.msra.gmra.mxu3 %vm718_vm1, %v737_v37 }
 0x218   : > { %v763_v40 = vpop.f32.mrf.mxu3 }
 0x219   : > { %v766_v41 = vmul.f32 %v763_v40, %v1718_v7 }
 0x21b   : > { %v767_v42 = vsel %vm627_vm0, %v766_v41, 0.0 }
 0x21c   : > { %v768_v43 = vrot.slane %v767_v42, 4 }
 0x21e   : > { %v769_v44 = vadd.f32 %v768_v43, %v767_v42 }
 0x220   : > { %v770_v45 = vrot.slane %v769_v44, 2 }
 0x222   : > { %v771_v46 = vadd.f32 %v770_v45, %v769_v44 }
 0x224   : > { %v772_v47 = vrot.slane %v771_v46, 1 }
 0x226   : > { %v773_v48 = vadd.f32 %v772_v47, %v771_v46 }
 0x228   : > { %775 = vrot.lane.b32.xlu0 %v773_v48, %s1479_s28 }
 0x29a   : > { %v776_v53 = vpop.permute.xlu0 %775 }
 0x29b   : > { %v778_v54 = vmul.f32 %v776_v53, %v677_v52 }
 0x29d   : > { %v779_v55 = vpack.c.bf16 %v778_v54, %v778_v54  ;;  %864 = vrot.lane.b32.xlu1 %v778_v54, %s1480_s17 }
 0x29f   : > { %789 = vrot.lane.b32.xlu0 %v779_v55, %s1480_s17  ;;  %s937_s17 = sshll.u32 %s582_s26, 4  ;;  %s938_s17 = int_to_ptr.vmem [resolvable:$true] %s937_s17 }
 0x30f   : > { %v865_v20 = vpop.permute.xlu1 %864 }
 0x311   : > { %v790_v56 = vpop.permute.xlu0 %789 }
 0x312   : > { %1160 = vmatmul.msk.bf16.vlgmr.msrb.gmra.mxu3 %vm627_vm0, %v790_v56 }
 0x395   : > { %v815_v58 = vpop.f32.mrf.mxu3 }
 0x396   : > { %v816_v59 = vadd.f32 %v1265_v57, %v815_v58 }
 0x398   : > { %v819_v60 = vmul.f32 0.35355338, %v816_v59 }
 0x39a   : > { %v820_v61 = vsel %vm718_vm1, %v819_v60, -inf }
 0x39b   : > { %v821_v62 = vrot.slane %v820_v61, 4 }
 0x39d   : > { %v822_v63 = vmax.f32 %v820_v61, %v821_v62  ;;  %v817_v0 = vpop.f32.mrf.mxu3 }
 0x39f   : > { %v823_v1 = vrot.slane %v822_v63, 2 }
 0x3a1   : > { %v824_v2 = vmax.f32 %v822_v63, %v823_v1 }
 0x3a3   : > { %v825_v3 = vrot.slane %v824_v2, 1 }
 0x3a5   : > { %v826_v4 = vmax.f32 %v824_v2, %v825_v3 }
 0x3a7   : > { %v827_v5 = vsub.f32 %v819_v60, %v826_v4 }
 0x3a9   : > { %v828_v6 = vmul.f32 1.442695, %v827_v5 }
 0x3ab   : > { %1271 = vpow2.f32 %v828_v6 }
 0x3b1   : > { %v1272_v8 = vpop.eup %1271 }
 0x3b2   : > { %v830_v9 = vsel %vm718_vm1, %v1272_v8, 0.0 }
 0x3b3   : > { %v831_v10 = vrot.slane %v830_v9, 4 }
 0x3b5   : > { %v832_v11 = vadd.f32 %v831_v10, %v830_v9 }
 0x3b7   : > { %v833_v12 = vrot.slane %v832_v11, 2 }
 0x3b9   : > { %v834_v13 = vadd.f32 %v833_v12, %v832_v11 }
 0x3bb   : > { %v835_v14 = vrot.slane %v834_v13, 1 }
 0x3bd   : > { %v836_v15 = vadd.f32 %v835_v14, %v834_v13 }
 0x3bf   : > { %1273 = vrcp.f32 %v836_v15 }
 0x3c5   : > { %v1274_v16 = vpop.eup %1273 }
 0x3c6   : > { %v838_v17 = vmul.f32 %v1274_v16, %v1272_v8 }
 0x3c8   : > { %839 = vst.msk [vmem:[%s602_s29] sm:$0xff] %vm718_vm1, %v838_v17  ;;  %1162 = vmatmul.msk.f32.vlgmr.msrb.gmra.mxu0 %vm718_vm1, %v838_v17 }
 0x445   : > { %v860_v21 = vpop.f32.mrf.mxu0 }
 0x446   : > { %v867_v22 = vmul.f32 %v865_v20, %v860_v21 }
 0x448   : > { %v868_v23 = vsel %vm627_vm0, %v867_v22, 0.0 }
 0x449   : > { %v869_v24 = vrot.slane %v868_v23, 4 }
 0x44b   : > { %v870_v25 = vadd.f32 %v869_v24, %v868_v23 }
 0x44d   : > { %v871_v26 = vrot.slane %v870_v25, 2 }
 0x44f   : > { %v872_v27 = vadd.f32 %v871_v26, %v870_v25 }
 0x451   : > { %v873_v28 = vrot.slane %v872_v27, 1 }
 0x453   : > { %v874_v29 = vadd.f32 %v873_v28, %v872_v27 }
 0x455   : > { %v875_v30 = vmul.f32 %v874_v29, %v677_v52 }
 0x457   : > { %v876_v31 = vpack.c.bf16 %v875_v30, %v875_v30 }
 0x459   : > { %1171 = vmatmul.msk.bf16.vlgmr.msrb.gmra.mxu1 %vm627_vm0, %v876_v31 }
 0x4d6   : > { %v905_v33 = vpop.f32.mrf.mxu1 }
 0x4d7   : > { %v909_v34 = vadd.f32 %v905_v33, %v1718_v7 }
 0x4d9   : > { %v914_v35 = vadd.f32 %v1266_v32, %v909_v34 }
 0x4db   : > { %915 = vst.msk [vmem:[%s582_s26] sm:$0xff] %vm627_vm0, %v914_v35 }
 0x4dc   : > { %1422 = shalt.err (!%p1419_p13)
}
 0x4dd   : > { %1198 = dma.vmem_to_hbm [thread:$0]  (%p1630_p5), %s938_s17, 128, %s940_s12, %s917_s22  }
 0x4de   : > { %v907_v7 = vpop.f32.mrf.mxu1 }
 0x4df PF: > { %s1865_s13 = sld [smem:[#allocation16_spill]] }
 0x4e0   : > { %s1867_s23 = sld [smem:[#allocation18_spill]] }
 0x4e5   : > { %s957_s28 = sand.u32 1, %s1865_s13  }
 0x4e6   : > { %p1868_p9 = scmp.ge.s32.totalorder %s1867_s23, 2  ;;  %s958_s24 = scalar_lea.sflag [#allocation4], %s957_s28 }
 0x4e8   : > { %p1215_p0 = pnand %p1868_p9, %p1596_p6 }
 0x4ea   : > { %p1216_p3 = pneg %p1215_p0 }
 0x4ec   : > { %1456 = dma.done.wait (%p1216_p3), %s958_s24, 128  }
 0x4ed   : > { %1458 = vsyncadd (%p1216_p3), %s958_s24, 4294967168  ;;  %s1869_s21 = sld [smem:[#allocation20_spill]]  ;;  %s1872_s18 = smov %s1465_s19 }
 0x4ee   : > { %s1870_s25 = sld [smem:[#allocation17_spill]] }
 0x4ef   : > { %s1871_s20 = sld [smem:[#allocation21_spill]] }
 0x4f3   : > { %p33_p7 = scmp.ge.s32.totalorder %s1869_s21, 4  }
 0x4f4   : > { %s1873_s19 = smov %s1870_s25 }
 0x4f5   :  { %35 = sbr.rel (!%p33_p7) target bundleno = 16 (0x10), region = 162 }
 0x4fa   :  { %978 = vsyncpa [#allocation3], 1 }
 0x4fb   :  { %980 = vsyncpa [#allocation3 + $0x1], 1 }
 0x4fc   :  { %981 = vsyncpa [#allocation6], 1 }
 0x4fd   :  { %983 = vsyncpa [#allocation6 + $0x1], 1 }
 0x4fe   :  { %984 = vsyncpa [#allocation9], 1 }
 0x4ff   :  { %985 = vsyncpa [#allocation4], 1 }
 0x500   :  { %987 = vsyncpa [#allocation4 + $0x1], 1 }

</bundles_post_ra>
